<compile_context>
chip_gen: v6e
topology: v6e:2x2x1
jax: 0.10.0
libtpu: 0.0.40
codegen_flags: <defaults>
</compile_context>

<pallas_src>
import functools
import math

import jax
import jax.numpy as jnp
from jax.experimental import pallas as pl
from jax.experimental.pallas import tpu as pltpu


# ---------------------------------------------------------------------------
# Generation-aware VMEM sizing (review: don't hard-code a v7x-safe constant).
# ---------------------------------------------------------------------------
@functools.lru_cache(maxsize=None)
def _vmem_caps():
    try:
        cap = int(pltpu.get_tpu_info().vmem_capacity_bytes)
    except Exception:                       # fallback: assume smallest (v7x, 64 MiB)
        cap = 64 * 2 ** 20
    budget = int(cap * 0.70)                # working-set budget for the tiles
    limit = int(cap * 0.85)                 # scoped-vmem limit handed to Mosaic
    return budget, limit


def _round_up(x, m):
    return (x + m - 1) // m * m


def _choose_row_tile(M, K, N, itemsize):
    """Row tile for an (M,K)@(K,N) matmul whose K and N are full (small) dims."""
    budget, _ = _vmem_caps()
    sub = 16 if itemsize == 2 else 8         # sublane multiple for the dtype
    tm = min(_round_up(M, sub), 1024)        # raised cap (was 128): kernel is mem-bound

    def footprint(tm_):
        # double-buffered x & out tiles + (double-buffered) resident bf16 weights
        return 2 * tm_ * K * itemsize + 2 * tm_ * N * itemsize + 2 * K * N * 2

    while footprint(tm) > budget and tm > sub:
        tm = max(sub, _round_up(tm // 2, sub))
    # keep >=2 "parallel" grid blocks so both v7x TensorCores get work
    if _round_up(M, tm) // tm < 2 and tm >= 2 * sub:
        tm = _round_up(tm // 2, sub)
    return tm


# ---------------------------------------------------------------------------
# Generic row-streamed matmul kernel:  out = x2d @ w     (w stays VMEM-resident)
# ---------------------------------------------------------------------------
def _rowmm_kernel(x_ref, w_ref, o_ref):
    x = x_ref[...]
    w = w_ref[...].astype(x.dtype)           # bf16 in HBM/VMEM, upcast at MXU input
    o_ref[...] = jnp.dot(x, w, preferred_element_type=jnp.float32).astype(o_ref.dtype)


def _right_matmul(x2d, w):
    """x2d (M, K) @ w (K, N); K, N are full (<= max(H, W)) dims, M is streamed."""
    M, K = x2d.shape
    N = w.shape[1]
    tm = _choose_row_tile(M, K, N, jnp.dtype(x2d.dtype).itemsize)
    M_pad = _round_up(M, tm)
    if M_pad != M:
        x2d = jnp.pad(x2d, ((0, M_pad - M), (0, 0)))
    _, vmem_limit = _vmem_caps()
    out = pl.pallas_call(
        _rowmm_kernel,
        out_shape=jax.ShapeDtypeStruct((M_pad, N), x2d.dtype),
        grid_spec=pltpu.PrefetchScalarGridSpec(
            num_scalar_prefetch=0,
            grid=(M_pad // tm,),
            in_specs=[
                pl.BlockSpec((tm, K), lambda m: (m, 0)),   # x: streamed exactly once
                pl.BlockSpec((K, N), lambda m: (0, 0)),    # weights: VMEM-resident
            ],
            out_specs=pl.BlockSpec((tm, N), lambda m: (m, 0)),
        ),
        compiler_params=pltpu.CompilerParams(
            dimension_semantics=("parallel",),
            vmem_limit_bytes=vmem_limit,
        ),
    )(x2d, w)
    return out[:M] if M_pad != M else out


# ---------------------------------------------------------------------------
# Elementwise uniform quantise + dequantise of the wavelet coefficients.
# ---------------------------------------------------------------------------
def _quant_kernel(c_ref, o_ref, *, inv_step, step):
    c = c_ref[...].astype(jnp.float32)
    q = jnp.floor(c * inv_step + 0.5) * step
    o_ref[...] = q.astype(o_ref.dtype)


def _quantize(coeffs2d, step):
    M, W = coeffs2d.shape
    tm = _choose_row_tile(M, W, W, jnp.dtype(coeffs2d.dtype).itemsize)
    M_pad = _round_up(M, tm)
    if M_pad != M:
        coeffs2d = jnp.pad(coeffs2d, ((0, M_pad - M), (0, 0)))
    _, vmem_limit = _vmem_caps()
    out = pl.pallas_call(
        functools.partial(_quant_kernel, inv_step=float(1.0 / step), step=float(step)),
        out_shape=jax.ShapeDtypeStruct((M_pad, W), coeffs2d.dtype),
        grid_spec=pltpu.PrefetchScalarGridSpec(
            num_scalar_prefetch=0,
            grid=(M_pad // tm,),
            in_specs=[pl.BlockSpec((tm, W), lambda m: (m, 0))],
            out_specs=pl.BlockSpec((tm, W), lambda m: (m, 0)),
        ),
        compiler_params=pltpu.CompilerParams(
            dimension_semantics=("parallel",),
            vmem_limit_bytes=vmem_limit,
        ),
    )(coeffs2d)
    return out[:M] if M_pad != M else out


# ---------------------------------------------------------------------------
# Cached orthonormal Haar analysis matrices (bf16 weights; f32 accumulation).
# ---------------------------------------------------------------------------
@functools.lru_cache(maxsize=None)
def _haar_matrices(n):
    """Orthonormal 1-D Haar analysis matrix A (n x n) and its transpose, in bf16.

    Rows [0, n/2) are the scaled averages (approximation) and rows [n/2, n) the
    scaled differences (detail), matching JPEG2000's subband layout.
    """
    h = n // 2
    s = 1.0 / math.sqrt(2.0)
    i = jnp.arange(h)
    a = jnp.zeros((n, n), jnp.float32)
    a = a.at[i, 2 * i].set(s).at[i, 2 * i + 1].set(s)
    a = a.at[h + i, 2 * i].set(s).at[h + i, 2 * i + 1].set(-s)
    a = a.astype(jnp.bfloat16)
    return a, a.T


def _num_levels(H, W):
    levels = max(1, min(3, int(math.log2(min(H, W))) - 2))
    while levels > 0 and (H % (1 << levels) or W % (1 << levels)):
        levels -= 1
    return levels


def _dwt2_level(x3d, analysis):
    """One separable 2-D Haar (inverse) transform level on x3d of shape (B, h, w)."""
    B, h, w = x3d.shape
    a_h, a_h_t = _haar_matrices(h)
    a_w, a_w_t = _haar_matrices(w)
    # width pass:  X @ A_w^T (analysis)  /  X @ A_w (synthesis)
    t = _right_matmul(x3d.reshape(B * h, w), a_w_t if analysis else a_w)
    t = t.reshape(B, h, w)
    # height pass via a small batched transpose (XLA glue; the weight matrix is
    # the part kept VMEM-resident inside the kernel).
    t = jnp.swapaxes(t, 1, 2).reshape(B * w, h)
    t = _right_matmul(t, a_h_t if analysis else a_h).reshape(B, w, h)
    return jnp.swapaxes(t, 1, 2)


# ---------------------------------------------------------------------------
# Forward pass: Pallas surrogate of JPEG2000Compress.forward(x), x in NCHW.
# ---------------------------------------------------------------------------
def jpeg2000_compress(x, quality=8, mode=None, mean=None, std=None):
    del mode  # TODO(synk): JPEG2000 `mode` (rate vs quality layers) not modelled.
    N, C, H, W = x.shape
    orig_dtype = x.dtype

    mean_a = std_a = None
    if mean is not None and std is not None:
        mean_a = jnp.asarray(mean, jnp.float32).reshape(1, -1, 1, 1)
        std_a = jnp.asarray(std, jnp.float32).reshape(1, -1, 1, 1)
        x = x * std_a + mean_a                       # de-normalise back to [0, 1]

    levels = _num_levels(H, W)
    step = 2.0 ** (1 - int(quality))

    coeffs = x.reshape(N * C, H, W)

    # analysis: multi-level separable DWT
    h, w = H, W
    for _ in range(levels):
        coeffs = coeffs.at[:, :h, :w].set(_dwt2_level(coeffs[:, :h, :w], True))
        h //= 2
        w //= 2

    # the lossy step: uniform quantisation of all subbands
    coeffs = _quantize(coeffs.reshape(N * C * H, W), step).reshape(N * C, H, W)

    # synthesis: inverse DWT
    for lvl in reversed(range(levels)):
        h, w = H >> lvl, W >> lvl
        coeffs = coeffs.at[:, :h, :w].set(_dwt2_level(coeffs[:, :h, :w], False))

    out = jnp.clip(coeffs.reshape(N, C, H, W), 0.0, 1.0)
    if mean_a is not None:
        out = (out - mean_a) / std_a                 # re-normalise
    return out.astype(orig_dtype)


# ---------------------------------------------------------------------------
# Pure-JAX reference (same math, plain einsum) for correctness checking.
# ---------------------------------------------------------------------------
def jpeg2000_compress_ref(x, quality=8, mode=None, mean=None, std=None):
    del mode
    N, C, H, W = x.shape
    orig_dtype = x.dtype
    xf = x.astype(jnp.float32)
    mean_a = std_a = None
    if mean is not None and std is not None:
        mean_a = jnp.asarray(mean, jnp.float32).reshape(1, -1, 1, 1)
        std_a = jnp.asarray(std, jnp.float32).reshape(1, -1, 1, 1)
        xf = xf * std_a + mean_a

    levels = _num_levels(H, W)
    step = 2.0 ** (1 - int(quality))

    def level2d(sub, analysis):
        _, h, w = sub.shape
        ah = _haar_matrices(h)[0].astype(jnp.float32)
        aw = _haar_matrices(w)[0].astype(jnp.float32)
        if analysis:
            return jnp.einsum("uh,bhw,vw->buv", ah, sub, aw)
        return jnp.einsum("hu,bhw,wv->buv", ah, sub, aw)

    coeffs = xf.reshape(N * C, H, W)
    h, w = H, W
    for _ in range(levels):
        coeffs = coeffs.at[:, :h, :w].set(level2d(coeffs[:, :h, :w], True))
        h //= 2
        w //= 2
    coeffs = jnp.floor(coeffs / step + 0.5) * step
    for lvl in reversed(range(levels)):
        h, w = H >> lvl, W >> lvl
        coeffs = coeffs.at[:, :h, :w].set(level2d(coeffs[:, :h, :w], False))
    out = jnp.clip(coeffs.reshape(N, C, H, W), 0.0, 1.0)
    if mean_a is not None:
        out = (out - mean_a) / std_a
    return out.astype(orig_dtype)


if __name__ == "__main__":
    key = jax.random.PRNGKey(0)
    k1, k2 = jax.random.split(key)

    # Primary small test (NCHW, PyTorch convention); pixels in [0, 1], default args.
    x = jax.random.uniform(k1, (2, 4, 16, 16), dtype=jnp.float32)
    y = jax.block_until_ready(jpeg2000_compress(x, quality=8))
    y_ref = jpeg2000_compress_ref(x, quality=8)
    assert y.shape == x.shape and y.dtype == x.dtype
    assert bool(jnp.all(y >= 0.0)) and bool(jnp.all(y <= 1.0))
    # tolerance covers bf16 weights / accumulation-order noise and rare quantiser
    # tie flips (each bounded by one quantisation step).
    assert jnp.allclose(y, y_ref, atol=2e-2), "mismatch vs reference (16x16)"

    # Second test: non-square, non-lane-aligned shape with mean/std (de/re-normalise).
    mean = (0.5, 0.5, 0.5)
    std = (0.5, 0.5, 0.5)
    x2 = jax.random.uniform(k2, (2, 3, 24, 40), dtype=jnp.float32) * 2.0 - 1.0
    y2 = jax.block_until_ready(jpeg2000_compress(x2, quality=8, mean=mean, std=std))
    y2_ref = jpeg2000_compress_ref(x2, quality=8, mean=mean, std=std)
    assert y2.shape == x2.shape and y2.dtype == x2.dtype
    assert jnp.allclose(y2, y2_ref, atol=2e-2), "mismatch vs reference (24x40)"

    print("KERNEL_OK")
</pallas_src>

<mosaic_0001>
module attributes {stable_mosaic.version = 11 : i64} {
  func.func @_rowmm_kernel(%arg0: i32, %arg1: memref<64x16xf32, #tpu.memory_space<vmem>>, %arg2: memref<16x16xbf16, #tpu.memory_space<vmem>>, %arg3: memref<64x16xf32, #tpu.memory_space<vmem>>) attributes {dimension_semantics = [#tpu.dimension_semantics<parallel>], iteration_bounds = array<i64: 2>, scalar_prefetch = 0 : i64, scratch_operands = 0 : i64, tpu.core_type = #tpu.core_type<tc>, window_params = [{transform_indices = @transform_0, window_bounds = array<i64: 64, 16>}, {pipeline_mode = #tpu.pipeline_mode<synchronous>, transform_indices = @transform_1, window_bounds = array<i64: 16, 16>}, {transform_indices = @transform_2, window_bounds = array<i64: 64, 16>}]} {
    %c0 = arith.constant 0 : index
    %c0_0 = arith.constant 0 : index
    %0 = vector.load %arg1[%c0, %c0_0] : memref<64x16xf32, #tpu.memory_space<vmem>>, vector<64x16xf32>
    %c0_1 = arith.constant 0 : index
    %c0_2 = arith.constant 0 : index
    %1 = vector.load %arg2[%c0_1, %c0_2] : memref<16x16xbf16, #tpu.memory_space<vmem>>, vector<16x16xbf16>
    %2 = arith.extf %1 : vector<16x16xbf16> to vector<16x16xf32>
    %cst = arith.constant dense<0.000000e+00> : vector<64x16xf32>
    %3 = tpu.matmul %0, %2, %cst {dimension_numbers = #tpu.dot_dimension_numbers<[1], [0], [0], [1], [0, 0, 1, 1], [], []>} : vector<64x16xf32>, vector<16x16xf32>, vector<64x16xf32> -> vector<64x16xf32>
    %c0_3 = arith.constant 0 : index
    %c0_4 = arith.constant 0 : index
    %4 = vector.load %arg3[%c0_3, %c0_4] : memref<64x16xf32, #tpu.memory_space<vmem>>, vector<64x16xf32>
    tpu.vector_store %arg3[%c0_3, %c0_4], %3 {strides = array<i32>} : memref<64x16xf32, #tpu.memory_space<vmem>>, vector<64x16xf32>,
    return
  }
  func.func @transform_0(%arg0: i32) -> (i32, i32) {
    %c0_i32 = arith.constant 0 : i32
    %c0_i32_0 = arith.constant 0 : i32
    return %arg0, %c0_i32 : i32, i32
  }
  func.func @transform_1(%arg0: i32) -> (i32, i32) {
    %c0_i32 = arith.constant 0 : i32
    %c0_i32_0 = arith.constant 0 : i32
    %c0_i32_1 = arith.constant 0 : i32
    return %c0_i32, %c0_i32_0 : i32, i32
  }
  func.func @transform_2(%arg0: i32) -> (i32, i32) {
    %c0_i32 = arith.constant 0 : i32
    %c0_i32_0 = arith.constant 0 : i32
    return %arg0, %c0_i32 : i32, i32
  }
}

</mosaic_0001>

<bundles_post_ra>
// kernel: tpu_custom_call.1
= control target key start
LH: loop header
LB: loop body
LE: loop exit
PB: predicated region body
PF: predicated region fallthrough
CT: control target
= control target key end

     0   :  { %s437_s9 = smov 0   ;;  %s473_s0 = inlined_call_operand.vmem [shape: f32[128,16], index: 0, kind: input, shape index: {}]   ;;  %s474_s1 = inlined_call_operand.vmem [shape: bf16[16,16], index: 1, kind: input, shape index: {}]   ;;  %s475_s2 = inlined_call_operand.vmem [shape: f32[128,16], index: 2, kind: output, shape index: {}]  }
   0x1 LB: > { %s353_s10 = sadd.s32 4294967295, %s420_s9   ;;  %p357_p0 = scmp.ge.s32.totalorder %s420_s9, 1  ;;  %s420_s9 = sphi %s437_s9, %s12_s9  }
   0x2   : > { %p113_p1 = scmp.lt.s32.totalorder %s420_s9, 3 }
   0x4   : > { %p114_p2 = pnand %p357_p0, %p113_p1 }
   0x5   : > { %s358_s13 = sshll.u32 (!%p114_p2), %s353_s10, 3 }
   0x6   : > { %117 = sbr.rel (%p114_p2) target bundleno = 219 (0xdb), region = 28  ;;  %p136_p3 = scmp.lt.s32.totalorder (!%p114_p2), %s358_s13, 15 }
   0xb   : > { %v373_v0 = vld [vmem:[%s474_s1] sm:$0xff]   ;;  %s477_s13 = smov (!%p136_p3, %s358_s13), 15  ;;  %vm159_vm0 = vcmask 130048  }
   0xc   : > { %v375_v1 = vunpack.c.h.bf16 %v373_v0  ;;  %v374_v2 = vunpack.c.l.bf16 %v373_v0  ;;  %s359_s14 = sshll.u32 %s477_s13, 3 }
   0xd   : > { %s139_s17 = scalar_lea.vmem %s473_s0, %s359_s14  ;;  %s145_s20 = scalar_lea.vmem %s475_s2, %s359_s14 }
   0xe   : > { %386 = vmatprep.subr.mxu0 %v375_v1  ;;  %402 = vmatprep.subr.mxu1 %v375_v1  ;;  %v147_v3 = vld [vmem:[%s139_s17] sm:$0xff]  ;;  %v148_v5 = vld [vmem:[%s139_s17 + $0x8] sm:$0xff]  ;;  %v149_v7 = vld [vmem:[%s139_s17 + $0x10] sm:$0xff] }
   0xf   : > { %387 = vmatpush3.msra.mxu0 %v375_v1  ;;  %404 = vmatpush3.msra.mxu1 %v375_v1  ;;  %v151_v4 = vld [vmem:[%s139_s17 + $0x20] sm:$0xff]  ;;  %v152_v6 = vld [vmem:[%s139_s17 + $0x28] sm:$0xff]  ;;  %v153_v8 = vld [vmem:[%s139_s17 + $0x30] sm:$0xff] }
  0x10   : > { %388 = vmatprep.subr.mxu0 %v374_v2  ;;  %403 = vmatprep.subr.mxu1 %v374_v2  ;;  %v150_v9 = vld [vmem:[%s139_s17 + $0x18] sm:$0xff] }
  0x11   : > { %389 = vmatpush3.msra.mxu0 %v374_v2  ;;  %405 = vmatpush3.msra.mxu1 %v374_v2  ;;  %v154_v10 = vld [vmem:[%s139_s17 + $0x38] sm:$0xff] }
  0x12   : > { %390 = vmatprep.mubr.msk.f32.mxu0 %vm159_vm0, %v147_v3  ;;  %396 = vmatprep.mubr.msk.f32.mxu1 %vm159_vm0, %v151_v4 }
  0x13   : > { %391 = vmatmul.mubr.msk.f32.vlgmr.msra.gmra.mxu0 %vm159_vm0, %v148_v5  ;;  %397 = vmatmul.mubr.msk.f32.vlgmr.msra.gmra.mxu1 %vm159_vm0, %v152_v6 }
  0x14   : > { %393 = vmatprep.mubr.msk.f32.mxu0 %vm159_vm0, %v149_v7  ;;  %399 = vmatprep.mubr.msk.f32.mxu1 %vm159_vm0, %v153_v8 }
  0x17   : > { %394 = vmatmul.mubr.msk.f32.gmra.mxu0 %vm159_vm0, %v150_v9  ;;  %400 = vmatmul.mubr.msk.f32.gmra.mxu1 %vm159_vm0, %v154_v10 }
  0xd3   : > { %v392_v11 = vpop.f32.mrf.mxu0  ;;  %v398_v12 = vpop.f32.mrf.mxu1 }
  0xd4   : > { %290 = vst.msk [vmem:[%s145_s20 + $0x8] sm:$0xff] %vm159_vm0, %v392_v11  ;;  %294 = vst.msk [vmem:[%s145_s20 + $0x28] sm:$0xff] %vm159_vm0, %v398_v12 }
  0xd5   : > { %v250_v13 = vpop.f32.mrf.mxu0  ;;  %v270_v14 = vpop.f32.mrf.mxu1 }
  0xd6   : > { %289 = vst.msk [vmem:[%s145_s20] sm:$0xff] %vm159_vm0, %v250_v13  ;;  %293 = vst.msk [vmem:[%s145_s20 + $0x20] sm:$0xff] %vm159_vm0, %v270_v14 }
  0xd7   : > { %v395_v15 = vpop.f32.mrf.mxu0  ;;  %v401_v16 = vpop.f32.mrf.mxu1 }
  0xd8   : > { %292 = vst.msk [vmem:[%s145_s20 + $0x18] sm:$0xff] %vm159_vm0, %v395_v15  ;;  %296 = vst.msk [vmem:[%s145_s20 + $0x38] sm:$0xff] %vm159_vm0, %v401_v16 }
  0xd9   : > { %v260_v17 = vpop.f32.mrf.mxu0  ;;  %v280_v18 = vpop.f32.mrf.mxu1 }
  0xda   : > { %291 = vst.msk [vmem:[%s145_s20 + $0x10] sm:$0xff] %vm159_vm0, %v260_v17  ;;  %295 = vst.msk [vmem:[%s145_s20 + $0x30] sm:$0xff] %vm159_vm0, %v280_v18 }
  0xdb PF: > { %s12_s9 = sadd.s32 1, %s420_s9  }
  0xdc   : > { %p9_p4 = scmp.ge.s32.totalorder %s12_s9, 4  }
  0xde   :  { %11 = sbr.rel (!%p9_p4) target bundleno = 1 (0x1), region = 58 }

</bundles_post_ra>
